<compile_context>
chip_gen: v7x
topology: tpu7x:2x2x1
jax: 0.10.0
libtpu: 0.0.40
codegen_flags: <defaults>
</compile_context>

<pallas_src>
import functools

import jax
import jax.numpy as jnp
from jax.experimental import pallas as pl
from jax.experimental.pallas import tpu as pltpu

LANE = 128        # lane width; feature dims padded to multiples of this
BF16_PACK = 16    # bf16 packed vreg tile is (16, 128): batch-tile granularity
N_LAYERS = 8


def _round_up(n, m):
    return (n + m - 1) // m * m


def _zero_map(i):          # resident weights/biases: same block every grid step
    return (0, 0)


def _batch_map(i):         # activations / output: march over batch blocks
    return (i, 0)


def _has_bf16_vpu():
    """bf16 VALU exists on v6e/v7x; v5e (and older) run the ReLU in f32."""
    try:
        kind = jax.devices()[0].device_kind.lower()
    except Exception:
        return False
    return ("v6" in kind) or ("v7" in kind)


def _choose_tb(B, block_b, min_grid_steps):
    """Batch tile rows: multiple of 16 (bf16 sublane packing), snapped to a
    128-row multiple when large, capped so the batch grid has at least
    `min_grid_steps` blocks when the batch permits (v7x: 2 TensorCores)."""
    b_pad = _round_up(B, BF16_PACK)
    tb = max(BF16_PACK, min(_round_up(block_b, BF16_PACK), b_pad))
    if b_pad // tb < min_grid_steps:
        tb = max(BF16_PACK,
                 min(tb, _round_up(max(1, B // min_grid_steps), BF16_PACK)))
    if tb >= 256:
        tb = (tb // LANE) * LANE
    return tb


# ---------------------------------------------------------------------------
# Kernel
# ---------------------------------------------------------------------------
def mlp_kernel(x_ref, *rest, relu_in_bf16):
    """8-layer MLP body. rest = (w1, b1, ..., w8, b8, o_ref)."""
    o_ref = rest[-1]
    wb = rest[:-1]
    n_layers = len(wb) // 2

    # x arrives as padded f32; cast to bf16 in-kernel (VPU filler under the
    # MXU-bound layer loop) instead of materializing a bf16 copy in HBM.
    h = x_ref[...].astype(jnp.bfloat16)                  # (TB, F0) bf16

    for l in range(n_layers):
        w = wb[2 * l][...]                               # bf16 (F_in, F_out)
        b = wb[2 * l + 1][...]                           # f32  (1,  F_out)
        acc = jnp.dot(h, w, preferred_element_type=jnp.float32) + b
        if l < n_layers - 1:
            if relu_in_bf16:
                # v6e/v7x: packed bf16 VALU -> half the VPU ops for the ReLU.
                h = jnp.maximum(acc.astype(jnp.bfloat16), 0)
            else:
                # v5e: no bf16 VPU -> ReLU in f32, then cast for the next MXU pass.
                h = jnp.maximum(acc, 0.0).astype(jnp.bfloat16)
        else:
            h = acc                                      # final layer: f32 acc
    o_ref[...] = h.astype(o_ref.dtype)


# ---------------------------------------------------------------------------
# Parameter preparation (do ONCE, not per forward call)
# ---------------------------------------------------------------------------
def prepare_params(params):
    """Pad weights/biases to 128-multiples and cast (w->bf16, b->f32) once.
    The returned arrays never change; keep them alive across forward calls."""
    dims = [params["w1"].shape[0]] + [
        params[f"w{l}"].shape[1] for l in range(1, N_LAYERS + 1)]
    pdims = [_round_up(d, LANE) for d in dims]

    wb = []
    for l in range(1, N_LAYERS + 1):
        w = params[f"w{l}"]
        b = params[f"b{l}"]
        w_p = jnp.pad(w, ((0, pdims[l - 1] - w.shape[0]),
                          (0, pdims[l] - w.shape[1]))).astype(jnp.bfloat16)
        b_p = jnp.pad(b, (0, pdims[l] - b.shape[0])
                      ).reshape(1, -1).astype(jnp.float32)
        wb.extend([w_p, b_p])
    return {"wb": tuple(wb), "dims": tuple(dims), "pdims": tuple(pdims)}


# ---------------------------------------------------------------------------
# Forward wrapper
# ---------------------------------------------------------------------------
def reg_forward(x, prepared, *, block_b=512, min_grid_steps=2,
                out_dtype=jnp.float32, return_padded=False,
                relu_in_bf16=None):
    """x: (B, in_size) float32. prepared: output of prepare_params()."""
    dims, pdims = prepared["dims"], prepared["pdims"]
    wb = prepared["wb"]
    B, in_size = x.shape
    assert in_size == dims[0], (in_size, dims[0])
    out_size = dims[-1]

    TB = _choose_tb(B, block_b, min_grid_steps)
    Bp = _round_up(B, TB)

    # x stays f32 on the way in (single 4B/elem read); zero-pad batch+features.
    x_p = jnp.pad(x, ((0, Bp - B), (0, pdims[0] - in_size)))

    if relu_in_bf16 is None:
        relu_in_bf16 = _has_bf16_vpu()

    in_specs = [pl.BlockSpec((TB, pdims[0]), _batch_map)]
    for l in range(1, N_LAYERS + 1):
        in_specs.append(pl.BlockSpec((pdims[l - 1], pdims[l]), _zero_map))
        in_specs.append(pl.BlockSpec((1, pdims[l]), _zero_map))
    out_specs = pl.BlockSpec((TB, pdims[-1]), _batch_map)

    # Scheduler hint only; FLOPs use the TRUE (unpadded) layer dims.
    flops = 2 * B * sum(dims[l - 1] * dims[l] for l in range(1, N_LAYERS + 1))
    bytes_accessed = (x_p.size * x_p.dtype.itemsize
                      + sum(a.size * a.dtype.itemsize for a in wb)
                      + Bp * pdims[-1] * jnp.dtype(out_dtype).itemsize)
    cost = pl.CostEstimate(flops=flops, transcendentals=0,
                           bytes_accessed=bytes_accessed)

    kernel = functools.partial(mlp_kernel, relu_in_bf16=bool(relu_in_bf16))

    out_p = pl.pallas_call(
        kernel,
        out_shape=jax.ShapeDtypeStruct((Bp, pdims[-1]), out_dtype),
        grid=(Bp // TB,),
        in_specs=in_specs,
        out_specs=out_specs,
        compiler_params=pltpu.CompilerParams(
            dimension_semantics=("parallel",)),
        cost_estimate=cost,
    )(x_p, *wb)

    if return_padded:
        return out_p            # (Bp, 128-padded) slab: skips the slice copy
    return out_p[:B, :out_size]


# ---------------------------------------------------------------------------
# Init + reference (match the PyTorch module: Xavier-uniform W, zero bias)
# ---------------------------------------------------------------------------
def init_params(key, sizes):
    params = {}
    for i in range(1, len(sizes)):
        fan_in, fan_out = sizes[i - 1], sizes[i]
        key, kw = jax.random.split(key)
        bound = jnp.sqrt(6.0 / (fan_in + fan_out))
        params[f"w{i}"] = jax.random.uniform(
            kw, (fan_in, fan_out), jnp.float32, -bound, bound)
        params[f"b{i}"] = jnp.zeros((fan_out,), jnp.float32)
    return params


def reference_forward(x, params):
    h = x
    for l in range(1, N_LAYERS):
        h = jnp.maximum(h @ params[f"w{l}"] + params[f"b{l}"], 0.0)
    return h @ params[f"w{N_LAYERS}"] + params[f"b{N_LAYERS}"]


if __name__ == "__main__":
    # Small shapes consistent with the module:
    # in=32, hiddens 64/64/64/64/64/64/32, out=16.
    sizes = (32, 64, 64, 64, 64, 64, 64, 32, 16)
    B = 64

    key = jax.random.PRNGKey(0)
    key, kx = jax.random.split(key)
    x = jax.random.normal(kx, (B, sizes[0]), jnp.float32)
    params = init_params(key, sizes)

    # Pad/cast the weights exactly once (the per-call path only pads x).
    prepared = prepare_params(params)

    # Production default block_b=512; with B=64 the >=2-grid-step cap yields
    # TB=32 (16-aligned), grid=(2,): exercises the batch pipeline, the
    # VMEM-resident weights, and the megacore split path.
    y = reg_forward(x, prepared)
    y = jax.block_until_ready(y)

    y_ref = reference_forward(x, params)
    assert y.shape == (B, sizes[-1])
    # bf16 weights/activations with f32 accumulation vs the f32 reference.
    assert jnp.allclose(y, y_ref, atol=5e-2, rtol=5e-2), float(
        jnp.max(jnp.abs(y - y_ref)))

    print("KERNEL_OK")
</pallas_src>

<mosaic_0001>
module attributes {stable_mosaic.version = 11 : i64} {
  func.func @mlp_kernel(%arg0: i32, %arg1: memref<32x128xf32, #tpu.memory_space<vmem>>, %arg2: memref<128x128xbf16, #tpu.memory_space<vmem>>, %arg3: memref<1x128xf32, #tpu.memory_space<vmem>>, %arg4: memref<128x128xbf16, #tpu.memory_space<vmem>>, %arg5: memref<1x128xf32, #tpu.memory_space<vmem>>, %arg6: memref<128x128xbf16, #tpu.memory_space<vmem>>, %arg7: memref<1x128xf32, #tpu.memory_space<vmem>>, %arg8: memref<128x128xbf16, #tpu.memory_space<vmem>>, %arg9: memref<1x128xf32, #tpu.memory_space<vmem>>, %arg10: memref<128x128xbf16, #tpu.memory_space<vmem>>, %arg11: memref<1x128xf32, #tpu.memory_space<vmem>>, %arg12: memref<128x128xbf16, #tpu.memory_space<vmem>>, %arg13: memref<1x128xf32, #tpu.memory_space<vmem>>, %arg14: memref<128x128xbf16, #tpu.memory_space<vmem>>, %arg15: memref<1x128xf32, #tpu.memory_space<vmem>>, %arg16: memref<128x128xbf16, #tpu.memory_space<vmem>>, %arg17: memref<1x128xf32, #tpu.memory_space<vmem>>, %arg18: memref<32x128xf32, #tpu.memory_space<vmem>>) attributes {dimension_semantics = [#tpu.dimension_semantics<parallel>], iteration_bounds = array<i64: 2>, scalar_prefetch = 0 : i64, scratch_operands = 0 : i64, tpu.core_type = #tpu.core_type<tc>, window_params = [{transform_indices = @transform_0, window_bounds = array<i64: 32, 128>}, {pipeline_mode = #tpu.pipeline_mode<synchronous>, transform_indices = @transform_1, window_bounds = array<i64: 128, 128>}, {pipeline_mode = #tpu.pipeline_mode<synchronous>, transform_indices = @transform_2, window_bounds = array<i64: 1, 128>}, {pipeline_mode = #tpu.pipeline_mode<synchronous>, transform_indices = @transform_3, window_bounds = array<i64: 128, 128>}, {pipeline_mode = #tpu.pipeline_mode<synchronous>, transform_indices = @transform_4, window_bounds = array<i64: 1, 128>}, {pipeline_mode = #tpu.pipeline_mode<synchronous>, transform_indices = @transform_5, window_bounds = array<i64: 128, 128>}, {pipeline_mode = #tpu.pipeline_mode<synchronous>, transform_indices = @transform_6, window_bounds = array<i64: 1, 128>}, {pipeline_mode = #tpu.pipeline_mode<synchronous>, transform_indices = @transform_7, window_bounds = array<i64: 128, 128>}, {pipeline_mode = #tpu.pipeline_mode<synchronous>, transform_indices = @transform_8, window_bounds = array<i64: 1, 128>}, {pipeline_mode = #tpu.pipeline_mode<synchronous>, transform_indices = @transform_9, window_bounds = array<i64: 128, 128>}, {pipeline_mode = #tpu.pipeline_mode<synchronous>, transform_indices = @transform_10, window_bounds = array<i64: 1, 128>}, {pipeline_mode = #tpu.pipeline_mode<synchronous>, transform_indices = @transform_11, window_bounds = array<i64: 128, 128>}, {pipeline_mode = #tpu.pipeline_mode<synchronous>, transform_indices = @transform_12, window_bounds = array<i64: 1, 128>}, {pipeline_mode = #tpu.pipeline_mode<synchronous>, transform_indices = @transform_13, window_bounds = array<i64: 128, 128>}, {pipeline_mode = #tpu.pipeline_mode<synchronous>, transform_indices = @transform_14, window_bounds = array<i64: 1, 128>}, {pipeline_mode = #tpu.pipeline_mode<synchronous>, transform_indices = @transform_15, window_bounds = array<i64: 128, 128>}, {pipeline_mode = #tpu.pipeline_mode<synchronous>, transform_indices = @transform_16, window_bounds = array<i64: 1, 128>}, {transform_indices = @transform_17, window_bounds = array<i64: 32, 128>}]} {
    %c0 = arith.constant 0 : index
    %c0_0 = arith.constant 0 : index
    %0 = vector.load %arg1[%c0, %c0_0] : memref<32x128xf32, #tpu.memory_space<vmem>>, vector<32x128xf32>
    %1 = arith.truncf %0 : vector<32x128xf32> to vector<32x128xbf16>
    %c0_1 = arith.constant 0 : index
    %c0_2 = arith.constant 0 : index
    %2 = vector.load %arg2[%c0_1, %c0_2] : memref<128x128xbf16, #tpu.memory_space<vmem>>, vector<128x128xbf16>
    %c0_3 = arith.constant 0 : index
    %c0_4 = arith.constant 0 : index
    %3 = vector.load %arg3[%c0_3, %c0_4] : memref<1x128xf32, #tpu.memory_space<vmem>>, vector<1x128xf32>
    %cst = arith.constant dense<0.000000e+00> : vector<32x128xf32>
    %4 = tpu.matmul %1, %2, %cst {dimension_numbers = #tpu.dot_dimension_numbers<[1], [0], [0], [1], [0, 0, 1, 1], [], []>} : vector<32x128xbf16>, vector<128x128xbf16>, vector<32x128xf32> -> vector<32x128xf32>
    %5 = vector.broadcast %3 : vector<1x128xf32> to vector<32x128xf32>
    %6 = arith.addf %4, %5 : vector<32x128xf32>
    %cst_5 = arith.constant 0.000000e+00 : f32
    %7 = vector.broadcast %cst_5 : f32 to vector<32x128xf32>
    %8 = arith.maximumf %6, %7 : vector<32x128xf32>
    %9 = arith.truncf %8 : vector<32x128xf32> to vector<32x128xbf16>
    %c0_6 = arith.constant 0 : index
    %c0_7 = arith.constant 0 : index
    %10 = vector.load %arg4[%c0_6, %c0_7] : memref<128x128xbf16, #tpu.memory_space<vmem>>, vector<128x128xbf16>
    %c0_8 = arith.constant 0 : index
    %c0_9 = arith.constant 0 : index
    %11 = vector.load %arg5[%c0_8, %c0_9] : memref<1x128xf32, #tpu.memory_space<vmem>>, vector<1x128xf32>
    %cst_10 = arith.constant dense<0.000000e+00> : vector<32x128xf32>
    %12 = tpu.matmul %9, %10, %cst_10 {dimension_numbers = #tpu.dot_dimension_numbers<[1], [0], [0], [1], [0, 0, 1, 1], [], []>} : vector<32x128xbf16>, vector<128x128xbf16>, vector<32x128xf32> -> vector<32x128xf32>
    %13 = vector.broadcast %11 : vector<1x128xf32> to vector<32x128xf32>
    %14 = arith.addf %12, %13 : vector<32x128xf32>
    %cst_11 = arith.constant 0.000000e+00 : f32
    %15 = vector.broadcast %cst_11 : f32 to vector<32x128xf32>
    %16 = arith.maximumf %14, %15 : vector<32x128xf32>
    %17 = arith.truncf %16 : vector<32x128xf32> to vector<32x128xbf16>
    %c0_12 = arith.constant 0 : index
    %c0_13 = arith.constant 0 : index
    %18 = vector.load %arg6[%c0_12, %c0_13] : memref<128x128xbf16, #tpu.memory_space<vmem>>, vector<128x128xbf16>
    %c0_14 = arith.constant 0 : index
    %c0_15 = arith.constant 0 : index
    %19 = vector.load %arg7[%c0_14, %c0_15] : memref<1x128xf32, #tpu.memory_space<vmem>>, vector<1x128xf32>
    %cst_16 = arith.constant dense<0.000000e+00> : vector<32x128xf32>
    %20 = tpu.matmul %17, %18, %cst_16 {dimension_numbers = #tpu.dot_dimension_numbers<[1], [0], [0], [1], [0, 0, 1, 1], [], []>} : vector<32x128xbf16>, vector<128x128xbf16>, vector<32x128xf32> -> vector<32x128xf32>
    %21 = vector.broadcast %19 : vector<1x128xf32> to vector<32x128xf32>
    %22 = arith.addf %20, %21 : vector<32x128xf32>
    %cst_17 = arith.constant 0.000000e+00 : f32
    %23 = vector.broadcast %cst_17 : f32 to vector<32x128xf32>
    %24 = arith.maximumf %22, %23 : vector<32x128xf32>
    %25 = arith.truncf %24 : vector<32x128xf32> to vector<32x128xbf16>
    %c0_18 = arith.constant 0 : index
    %c0_19 = arith.constant 0 : index
    %26 = vector.load %arg8[%c0_18, %c0_19] : memref<128x128xbf16, #tpu.memory_space<vmem>>, vector<128x128xbf16>
    %c0_20 = arith.constant 0 : index
    %c0_21 = arith.constant 0 : index
    %27 = vector.load %arg9[%c0_20, %c0_21] : memref<1x128xf32, #tpu.memory_space<vmem>>, vector<1x128xf32>
    %cst_22 = arith.constant dense<0.000000e+00> : vector<32x128xf32>
    %28 = tpu.matmul %25, %26, %cst_22 {dimension_numbers = #tpu.dot_dimension_numbers<[1], [0], [0], [1], [0, 0, 1, 1], [], []>} : vector<32x128xbf16>, vector<128x128xbf16>, vector<32x128xf32> -> vector<32x128xf32>
    %29 = vector.broadcast %27 : vector<1x128xf32> to vector<32x128xf32>
    %30 = arith.addf %28, %29 : vector<32x128xf32>
    %cst_23 = arith.constant 0.000000e+00 : f32
    %31 = vector.broadcast %cst_23 : f32 to vector<32x128xf32>
    %32 = arith.maximumf %30, %31 : vector<32x128xf32>
    %33 = arith.truncf %32 : vector<32x128xf32> to vector<32x128xbf16>
    %c0_24 = arith.constant 0 : index
    %c0_25 = arith.constant 0 : index
    %34 = vector.load %arg10[%c0_24, %c0_25] : memref<128x128xbf16, #tpu.memory_space<vmem>>, vector<128x128xbf16>
    %c0_26 = arith.constant 0 : index
    %c0_27 = arith.constant 0 : index
    %35 = vector.load %arg11[%c0_26, %c0_27] : memref<1x128xf32, #tpu.memory_space<vmem>>, vector<1x128xf32>
    %cst_28 = arith.constant dense<0.000000e+00> : vector<32x128xf32>
    %36 = tpu.matmul %33, %34, %cst_28 {dimension_numbers = #tpu.dot_dimension_numbers<[1], [0], [0], [1], [0, 0, 1, 1], [], []>} : vector<32x128xbf16>, vector<128x128xbf16>, vector<32x128xf32> -> vector<32x128xf32>
    %37 = vector.broadcast %35 : vector<1x128xf32> to vector<32x128xf32>
    %38 = arith.addf %36, %37 : vector<32x128xf32>
    %cst_29 = arith.constant 0.000000e+00 : f32
    %39 = vector.broadcast %cst_29 : f32 to vector<32x128xf32>
    %40 = arith.maximumf %38, %39 : vector<32x128xf32>
    %41 = arith.truncf %40 : vector<32x128xf32> to vector<32x128xbf16>
    %c0_30 = arith.constant 0 : index
    %c0_31 = arith.constant 0 : index
    %42 = vector.load %arg12[%c0_30, %c0_31] : memref<128x128xbf16, #tpu.memory_space<vmem>>, vector<128x128xbf16>
    %c0_32 = arith.constant 0 : index
    %c0_33 = arith.constant 0 : index
    %43 = vector.load %arg13[%c0_32, %c0_33] : memref<1x128xf32, #tpu.memory_space<vmem>>, vector<1x128xf32>
    %cst_34 = arith.constant dense<0.000000e+00> : vector<32x128xf32>
    %44 = tpu.matmul %41, %42, %cst_34 {dimension_numbers = #tpu.dot_dimension_numbers<[1], [0], [0], [1], [0, 0, 1, 1], [], []>} : vector<32x128xbf16>, vector<128x128xbf16>, vector<32x128xf32> -> vector<32x128xf32>
    %45 = vector.broadcast %43 : vector<1x128xf32> to vector<32x128xf32>
    %46 = arith.addf %44, %45 : vector<32x128xf32>
    %cst_35 = arith.constant 0.000000e+00 : f32
    %47 = vector.broadcast %cst_35 : f32 to vector<32x128xf32>
    %48 = arith.maximumf %46, %47 : vector<32x128xf32>
    %49 = arith.truncf %48 : vector<32x128xf32> to vector<32x128xbf16>
    %c0_36 = arith.constant 0 : index
    %c0_37 = arith.constant 0 : index
    %50 = vector.load %arg14[%c0_36, %c0_37] : memref<128x128xbf16, #tpu.memory_space<vmem>>, vector<128x128xbf16>
    %c0_38 = arith.constant 0 : index
    %c0_39 = arith.constant 0 : index
    %51 = vector.load %arg15[%c0_38, %c0_39] : memref<1x128xf32, #tpu.memory_space<vmem>>, vector<1x128xf32>
    %cst_40 = arith.constant dense<0.000000e+00> : vector<32x128xf32>
    %52 = tpu.matmul %49, %50, %cst_40 {dimension_numbers = #tpu.dot_dimension_numbers<[1], [0], [0], [1], [0, 0, 1, 1], [], []>} : vector<32x128xbf16>, vector<128x128xbf16>, vector<32x128xf32> -> vector<32x128xf32>
    %53 = vector.broadcast %51 : vector<1x128xf32> to vector<32x128xf32>
    %54 = arith.addf %52, %53 : vector<32x128xf32>
    %cst_41 = arith.constant 0.000000e+00 : f32
    %55 = vector.broadcast %cst_41 : f32 to vector<32x128xf32>
    %56 = arith.maximumf %54, %55 : vector<32x128xf32>
    %57 = arith.truncf %56 : vector<32x128xf32> to vector<32x128xbf16>
    %c0_42 = arith.constant 0 : index
    %c0_43 = arith.constant 0 : index
    %58 = vector.load %arg16[%c0_42, %c0_43] : memref<128x128xbf16, #tpu.memory_space<vmem>>, vector<128x128xbf16>
    %c0_44 = arith.constant 0 : index
    %c0_45 = arith.constant 0 : index
    %59 = vector.load %arg17[%c0_44, %c0_45] : memref<1x128xf32, #tpu.memory_space<vmem>>, vector<1x128xf32>
    %cst_46 = arith.constant dense<0.000000e+00> : vector<32x128xf32>
    %60 = tpu.matmul %57, %58, %cst_46 {dimension_numbers = #tpu.dot_dimension_numbers<[1], [0], [0], [1], [0, 0, 1, 1], [], []>} : vector<32x128xbf16>, vector<128x128xbf16>, vector<32x128xf32> -> vector<32x128xf32>
    %61 = vector.broadcast %59 : vector<1x128xf32> to vector<32x128xf32>
    %62 = arith.addf %60, %61 : vector<32x128xf32>
    %c0_47 = arith.constant 0 : index
    %c0_48 = arith.constant 0 : index
    %63 = vector.load %arg18[%c0_47, %c0_48] : memref<32x128xf32, #tpu.memory_space<vmem>>, vector<32x128xf32>
    tpu.vector_store %arg18[%c0_47, %c0_48], %62 {strides = array<i32>} : memref<32x128xf32, #tpu.memory_space<vmem>>, vector<32x128xf32>,
    return
  }
  func.func @transform_0(%arg0: i32) -> (i32, i32) {
    %c0_i32 = arith.constant 0 : i32
    %c0_i32_0 = arith.constant 0 : i32
    return %arg0, %c0_i32 : i32, i32
  }
  func.func @transform_1(%arg0: i32) -> (i32, i32) {
    %c0_i32 = arith.constant 0 : i32
    %c0_i32_0 = arith.constant 0 : i32
    %c0_i32_1 = arith.constant 0 : i32
    return %c0_i32, %c0_i32_0 : i32, i32
  }
  func.func @transform_2(%arg0: i32) -> (i32, i32) {
    %c0_i32 = arith.constant 0 : i32
    %c0_i32_0 = arith.constant 0 : i32
    %c0_i32_1 = arith.constant 0 : i32
    return %c0_i32, %c0_i32_0 : i32, i32
  }
  func.func @transform_3(%arg0: i32) -> (i32, i32) {
    %c0_i32 = arith.constant 0 : i32
    %c0_i32_0 = arith.constant 0 : i32
    %c0_i32_1 = arith.constant 0 : i32
    return %c0_i32, %c0_i32_0 : i32, i32
  }
  func.func @transform_4(%arg0: i32) -> (i32, i32) {
    %c0_i32 = arith.constant 0 : i32
    %c0_i32_0 = arith.constant 0 : i32
    %c0_i32_1 = arith.constant 0 : i32
    return %c0_i32, %c0_i32_0 : i32, i32
  }
  func.func @transform_5(%arg0: i32) -> (i32, i32) {
    %c0_i32 = arith.constant 0 : i32
    %c0_i32_0 = arith.constant 0 : i32
    %c0_i32_1 = arith.constant 0 : i32
    return %c0_i32, %c0_i32_0 : i32, i32
  }
  func.func @transform_6(%arg0: i32) -> (i32, i32) {
    %c0_i32 = arith.constant 0 : i32
    %c0_i32_0 = arith.constant 0 : i32
    %c0_i32_1 = arith.constant 0 : i32
    return %c0_i32, %c0_i32_0 : i32, i32
  }
  func.func @transform_7(%arg0: i32) -> (i32, i32) {
    %c0_i32 = arith.constant 0 : i32
    %c0_i32_0 = arith.constant 0 : i32
    %c0_i32_1 = arith.constant 0 : i32
    return %c0_i32, %c0_i32_0 : i32, i32
  }
  func.func @transform_8(%arg0: i32) -> (i32, i32) {
    %c0_i32 = arith.constant 0 : i32
    %c0_i32_0 = arith.constant 0 : i32
    %c0_i32_1 = arith.constant 0 : i32
    return %c0_i32, %c0_i32_0 : i32, i32
  }
  func.func @transform_9(%arg0: i32) -> (i32, i32) {
    %c0_i32 = arith.constant 0 : i32
    %c0_i32_0 = arith.constant 0 : i32
    %c0_i32_1 = arith.constant 0 : i32
    return %c0_i32, %c0_i32_0 : i32, i32
  }
  func.func @transform_10(%arg0: i32) -> (i32, i32) {
    %c0_i32 = arith.constant 0 : i32
    %c0_i32_0 = arith.constant 0 : i32
    %c0_i32_1 = arith.constant 0 : i32
    return %c0_i32, %c0_i32_0 : i32, i32
  }
  func.func @transform_11(%arg0: i32) -> (i32, i32) {
    %c0_i32 = arith.constant 0 : i32
    %c0_i32_0 = arith.constant 0 : i32
    %c0_i32_1 = arith.constant 0 : i32
    return %c0_i32, %c0_i32_0 : i32, i32
  }
  func.func @transform_12(%arg0: i32) -> (i32, i32) {
    %c0_i32 = arith.constant 0 : i32
    %c0_i32_0 = arith.constant 0 : i32
    %c0_i32_1 = arith.constant 0 : i32
    return %c0_i32, %c0_i32_0 : i32, i32
  }
  func.func @transform_13(%arg0: i32) -> (i32, i32) {
    %c0_i32 = arith.constant 0 : i32
    %c0_i32_0 = arith.constant 0 : i32
    %c0_i32_1 = arith.constant 0 : i32
    return %c0_i32, %c0_i32_0 : i32, i32
  }
  func.func @transform_14(%arg0: i32) -> (i32, i32) {
    %c0_i32 = arith.constant 0 : i32
    %c0_i32_0 = arith.constant 0 : i32
    %c0_i32_1 = arith.constant 0 : i32
    return %c0_i32, %c0_i32_0 : i32, i32
  }
  func.func @transform_15(%arg0: i32) -> (i32, i32) {
    %c0_i32 = arith.constant 0 : i32
    %c0_i32_0 = arith.constant 0 : i32
    %c0_i32_1 = arith.constant 0 : i32
    return %c0_i32, %c0_i32_0 : i32, i32
  }
  func.func @transform_16(%arg0: i32) -> (i32, i32) {
    %c0_i32 = arith.constant 0 : i32
    %c0_i32_0 = arith.constant 0 : i32
    %c0_i32_1 = arith.constant 0 : i32
    return %c0_i32, %c0_i32_0 : i32, i32
  }
  func.func @transform_17(%arg0: i32) -> (i32, i32) {
    %c0_i32 = arith.constant 0 : i32
    %c0_i32_0 = arith.constant 0 : i32
    return %arg0, %c0_i32 : i32, i32
  }
}

</mosaic_0001>

<bundles_post_ra>
// kernel: tpu_custom_call.1
= control target key start
LH: loop header
LB: loop body
LE: loop exit
PB: predicated region body
PF: predicated region fallthrough
CT: control target
= control target key end

     0   :  { %s3269_s0 = inlined_call_operand.hbm [shape: f32[64,128], index: 0, kind: input, shape index: {}]   ;;  %s3270_s1 = inlined_call_operand.hbm [shape: bf16[128,128], index: 1, kind: input, shape index: {}]   ;;  %s3271_s2 = inlined_call_operand.vmem [shape: f32[1,128], index: 2, kind: input, shape index: {}]   ;;  %s3272_s3 = inlined_call_operand.hbm [shape: bf16[128,128], index: 3, kind: input, shape index: {}]   ;;  %s3273_s4 = inlined_call_operand.vmem [shape: f32[1,128], index: 4, kind: input, shape index: {}]   ;;  %s3274_s5 = inlined_call_operand.hbm [shape: bf16[128,128], index: 5, kind: input, shape index: {}]   ;;  %s3275_s6 = inlined_call_operand.vmem [shape: f32[1,128], index: 6, kind: input, shape index: {}]   ;;  %s3276_s7 = inlined_call_operand.hbm [shape: bf16[128,128], index: 7, kind: input, shape index: {}]   ;;  %s3277_s8 = inlined_call_operand.vmem [shape: f32[1,128], index: 8, kind: input, shape index: {}]   ;;  %s3278_s9 = inlined_call_operand.hbm [shape: bf16[128,128], index: 9, kind: input, shape index: {}]   ;;  %s3279_s10 = inlined_call_operand.vmem [shape: f32[1,128], index: 10, kind: input, shape index: {}]   ;;  %s3280_s11 = inlined_call_operand.hbm [shape: bf16[128,128], index: 11, kind: input, shape index: {}]   ;;  %s3281_s12 = inlined_call_operand.vmem [shape: f32[1,128], index: 12, kind: input, shape index: {}]   ;;  %s3282_s13 = inlined_call_operand.hbm [shape: bf16[128,128], index: 13, kind: input, shape index: {}]   ;;  %s3283_s14 = inlined_call_operand.vmem [shape: f32[1,128], index: 14, kind: input, shape index: {}]   ;;  %s3284_s15 = inlined_call_operand.hbm [shape: bf16[128,128], index: 15, kind: input, shape index: {}]   ;;  %s3285_s16 = inlined_call_operand.vmem [shape: f32[1,128], index: 16, kind: input, shape index: {}]   ;;  %s3286_s17 = inlined_call_operand.hbm [shape: f32[64,128], index: 17, kind: output, shape index: {}]  }
   0x1   :  { %3293 = sst [smem:[#allocation24_spill]] %s3269_s0 }
   0x2   :  { %3294 = sst [smem:[#allocation25_spill]] %s3270_s1 }
   0x3   :  { %3295 = sst [smem:[#allocation26_spill]] %s3273_s4 }
   0x4   :  { %3296 = sst [smem:[#allocation27_spill]] %s3274_s5 }
   0x5   :  { %3297 = sst [smem:[#allocation28_spill]] %s3275_s6 }
   0x6   :  { %3298 = sst [smem:[#allocation29_spill]] %s3277_s8 }
   0x7   :  { %3299 = sst [smem:[#allocation30_spill]] %s3279_s10 }
   0x8   :  { %3300 = sst [smem:[#allocation31_spill]] %s3281_s12 }
   0x9   :  { %3301 = sst [smem:[#allocation32_spill]] %s3283_s14 }
   0xa   :  { %3302 = sst [smem:[#allocation33_spill]] %s3285_s16 }
   0xb   :  { %3303 = sst [smem:[#allocation34_spill]] %s3286_s17 }
   0xc   :  { %22 = vsyncpa [#allocation3], 0 }
   0xd   :  { %24 = vsyncpa [#allocation3 + $0x1], 0 }
   0xe   :  { %25 = vsyncpa [#allocation6], 0 }
   0xf   :  { %26 = vsyncpa [#allocation9], 0 }
  0x10   :  { %27 = vsyncpa [#allocation12], 0 }
  0x11   :  { %28 = vsyncpa [#allocation15], 0 }
  0x12   :  { %29 = vsyncpa [#allocation4], 0 }
  0x13   :  { %31 = vsyncpa [#allocation4 + $0x1], 0  ;;  %s2846_s24 = smov 0   ;;  %s2848_s25 = smov 0  }
  0x14   :  { %s2850_s26 = smov 0   ;;  %s2852_s27 = smov 0  }
  0x15 LB: > { %s2740_s28 = smov [#allocation5]   ;;  %s2867_s0 = sadd.s32 4294967295, %s2738_s27   ;;  %s2738_s27 = sphi %s2852_s27, %s3339_s27   ;;  %s2734_s26 = sphi %s2850_s26, %s3338_s26   ;;  %s2730_s25 = sphi %s2848_s25, %s3337_s25   ;;  %s2726_s24 = sphi %s2846_s24, %s3336_s24  }
  0x16   : > { %s442_s29 = sshll.u32 %s2740_s28, 4  ;;  %p1862_p0 = scmp.ge.s32.totalorder %s2738_s27, 1  ;;  %s2872_s29 = int_to_ptr.vmem [resolvable:$true] %s442_s29 }
  0x17   : > { %p3290_p1 = scmp.eq.s32.totalorder %s2867_s0, 0  ;;  %p430_p2 = scmp.lt.s32.totalorder %s2738_s27, 3 }
  0x18   : > { %s2741_s18 = smov [#allocation8]   ;;  %s2742_s20 = smov [#allocation11]  }
  0x19   : > { %p2874_p3 = pnand %p1862_p0, %p430_p2  ;;  %s474_s19 = sshll.u32 %s2741_s18, 4  ;;  %s2887_s19 = int_to_ptr.vmem [resolvable:$true] %s474_s19 }
  0x1a   : > { %s506_s21 = sshll.u32 %s2742_s20, 4  ;;  %s3306_s28 = sld [smem:[#allocation25_spill]]  ;;  %s2889_s21 = int_to_ptr.vmem [resolvable:$true] %s506_s21 }
  0x1b   : > { %s3304_s30 = scalar_select %p2874_p3, 1, 0 }
  0x1c   : > { %p2241_p5 = pneg %p2874_p3 }
  0x1e   : > { %p2883_p6 = pnand %p2241_p5, %p3290_p1 }
  0x20   : > { %s2402_s17 = scalar_lea.hbm %s3306_s28, 1024  ;;  %p2899_p8 = pneg %p2883_p6 }
  0x21   : > { %p2403_p7 = scmp.ne.s32.totalorder %s3306_s28, %s2402_s17  ;;  %p2409_p11 = scmp.lt.u32.totalorder %s2402_s17, %s3306_s28 }
  0x23   : > { %p2405_p9 = pnand %p2899_p8, %p2403_p7 }
  0x25   : > { %p2406_p10 = pneg %p2405_p9 }
  0x27   : > { %p2411_p12 = pnand %p2409_p11, %p2406_p10 }
  0x29   : > { %2414 = shalt.err (!%p2411_p12)
}
  0x2a   : > { %s2415_s14 = scalar_lea.vmem %s2872_s29, 1024  ;;  %p2423_p5 = scmp.lt.s32.totalorder %s2872_s29, %s2872_s29 }
  0x2b   : > { %p2416_p13 = scmp.ne.s32.totalorder %s2872_s29, %s2415_s14  ;;  %p2424_p4 = scmp.lt.s32.totalorder %s2415_s14, %s2415_s14 }
  0x2d   : > { %p2418_p0 = pnand %p2416_p13, %p2899_p8  ;;  %p2425_p7 = por %p2424_p4, %p2423_p5 }
  0x2f   : > { %p2419_p2 = pneg %p2418_p0 }
  0x31   : > { %p2426_p9 = pnand %p2425_p7, %p2419_p2 }
  0x33   : > { %2429 = shalt.err (!%p2426_p9)
}
  0x34   : > { %s2743_s16 = smov 64   ;;  %s2744_s12 = smov 4  }
  0x35   : > { %2244 = dma.hbm_to_vmem [thread:$0]  (!%p2883_p6), %s3306_s28, 1024, %s2872_s29, [#allocation6], %s2743_s16, %s2743_s16, %s2744_s12  }
  0x36   : > { %s3308_s5 = sld [smem:[#allocation27_spill]] }
  0x3c   : > { %s2430_s14 = scalar_lea.hbm %s3308_s5, 1024 }
  0x3d   : > { %p2431_p4 = scmp.ne.s32.totalorder %s3308_s5, %s2430_s14  ;;  %p2437_p12 = scmp.lt.u32.totalorder %s2430_s14, %s3308_s5 }
  0x3f   : > { %p2433_p10 = pnand %p2431_p4, %p2899_p8 }
  0x41   : > { %p2434_p11 = pneg %p2433_p10 }
  0x43   : > { %p2439_p13 = pnand %p2437_p12, %p2434_p11 }
  0x45   : > { %2442 = shalt.err (!%p2439_p13)
}
  0x46   : > { %s2443_s29 = scalar_lea.vmem %s2887_s19, 1024  ;;  %p2451_p7 = scmp.lt.s32.totalorder %s2887_s19, %s2887_s19 }
  0x47   : > { %p2444_p0 = scmp.ne.s32.totalorder %s2887_s19, %s2443_s29  ;;  %p2452_p9 = scmp.lt.s32.totalorder %s2443_s29, %s2443_s29 }
  0x49   : > { %p2446_p2 = pnand %p2444_p0, %p2899_p8  ;;  %p2453_p4 = por %p2452_p9, %p2451_p7 }
  0x4b   : > { %p2447_p5 = pneg %p2446_p2 }
  0x4d   : > { %p2454_p10 = pnand %p2453_p4, %p2447_p5 }
  0x4f   : > { %2457 = shalt.err (!%p2454_p10)
}
  0x50   : > { %2250 = dma.hbm_to_vmem [thread:$0]  (!%p2883_p6), %s3308_s5, 1024, %s2887_s19, [#allocation9], %s2743_s16, %s2743_s16, %s2744_s12  }
  0x51   : > { %s2458_s17 = scalar_lea.hbm %s3278_s9, 1024 }
  0x52   : > { %p2459_p11 = scmp.ne.s32.totalorder %s3278_s9, %s2458_s17  ;;  %p2465_p0 = scmp.lt.u32.totalorder %s2458_s17, %s3278_s9 }
  0x54   : > { %p2461_p12 = pnand %p2459_p11, %p2899_p8 }
  0x56   : > { %p2462_p13 = pneg %p2461_p12 }
  0x58   : > { %p2467_p2 = pnand %p2465_p0, %p2462_p13 }
  0x5a   : > { %2470 = shalt.err (!%p2467_p2)
}
  0x5b   : > { %s2471_s19 = scalar_lea.vmem %s2889_s21, 1024  ;;  %p2479_p4 = scmp.lt.s32.totalorder %s2889_s21, %s2889_s21 }
  0x5c   : > { %p2472_p5 = scmp.ne.s32.totalorder %s2889_s21, %s2471_s19  ;;  %p2480_p10 = scmp.lt.s32.totalorder %s2471_s19, %s2471_s19 }
  0x5e   : > { %p2474_p7 = pnand %p2472_p5, %p2899_p8  ;;  %p2481_p11 = por %p2480_p10, %p2479_p4 }
  0x60   : > { %p2475_p9 = pneg %p2474_p7 }
  0x62   : > { %p2482_p12 = pnand %p2481_p11, %p2475_p9 }
  0x64   : > { %2485 = shalt.err (!%p2482_p12)
}
  0x65   : > { %2256 = dma.hbm_to_vmem [thread:$0]  (!%p2883_p6), %s3278_s9, 1024, %s2889_s21, [#allocation12], %s2743_s16, %s2743_s16, %s2744_s12  }
  0x66   : > { %s2745_s6 = smov [#allocation14]   ;;  %s2746_s10 = smov [#allocation7]  }
  0x67   : > { %s538_s8 = sshll.u32 %s2745_s6, 4  ;;  %s458_s17 = sshll.u32 %s2746_s10, 4  ;;  %s539_s8 = int_to_ptr.vmem [resolvable:$true] %s538_s8  ;;  %s459_s17 = int_to_ptr.vmem [resolvable:$true] %s458_s17 }
  0x68   : > { %s2486_s20 = scalar_lea.hbm %s3282_s13, 1024 }
  0x69   : > { %p2487_p13 = scmp.ne.s32.totalorder %s3282_s13, %s2486_s20  ;;  %p2493_p5 = scmp.lt.u32.totalorder %s2486_s20, %s3282_s13 }
  0x6b   : > { %p2489_p0 = pnand %p2487_p13, %p2899_p8 }
  0x6d   : > { %p2490_p2 = pneg %p2489_p0 }
  0x6f   : > { %p2495_p7 = pnand %p2493_p5, %p2490_p2 }
  0x71   : > { %2498 = shalt.err (!%p2495_p7)
}
  0x72   : > { %s2499_s21 = scalar_lea.vmem %s539_s8, 1024  ;;  %p2507_p11 = scmp.lt.s32.totalorder %s539_s8, %s539_s8 }
  0x73   : > { %p2500_p9 = scmp.ne.s32.totalorder %s539_s8, %s2499_s21  ;;  %p2508_p12 = scmp.lt.s32.totalorder %s2499_s21, %s2499_s21 }
  0x75   : > { %p2502_p4 = pnand %p2500_p9, %p2899_p8  ;;  %p2509_p1 = por %p2508_p12, %p2507_p11 }
  0x77   : > { %p2503_p10 = pneg %p2502_p4 }
  0x79   : > { %p2510_p3 = pnand %p2509_p1, %p2503_p10 }
  0x7b   : > { %2513 = shalt.err (!%p2510_p3)
}
  0x7c   : > { %2262 = dma.hbm_to_vmem [thread:$0]  (!%p2883_p6), %s3282_s13, 1024, %s539_s8, [#allocation15], %s2743_s16, %s2743_s16, %s2744_s12  }
  0x7d   : > { %s2514_s22 = scalar_lea.hbm %s3272_s3, 1024 }
  0x7e   : > { %p2515_p1 = scmp.ne.s32.totalorder %s3272_s3, %s2514_s22  ;;  %p2521_p0 = scmp.lt.u32.totalorder %s2514_s22, %s3272_s3 }
  0x80   : > { %p2517_p3 = pnand %p2515_p1, %p2899_p8 }
  0x82   : > { %p2518_p13 = pneg %p2517_p3 }
  0x84   : > { %p2523_p2 = pnand %p2521_p0, %p2518_p13 }
  0x86   : > { %2526 = shalt.err (!%p2523_p2)
}
  0x87   : > { %s2527_s29 = scalar_lea.vmem %s459_s17, 1024  ;;  %p2535_p4 = scmp.lt.s32.totalorder %s459_s17, %s459_s17 }
  0x88   : > { %p2528_p5 = scmp.ne.s32.totalorder %s459_s17, %s2527_s29  ;;  %p2536_p10 = scmp.lt.s32.totalorder %s2527_s29, %s2527_s29 }
  0x8a   : > { %p2530_p7 = pnand %p2528_p5, %p2899_p8  ;;  %p2537_p11 = por %p2536_p10, %p2535_p4 }
  0x8c   : > { %p2531_p9 = pneg %p2530_p7 }
  0x8e   : > { %p2538_p12 = pnand %p2537_p11, %p2531_p9 }
  0x90   : > { %2541 = shalt.err (!%p2538_p12)
}
  0x91   : > { %2247 = dma.hbm_to_vmem [thread:$0]  (!%p2883_p6), %s3272_s3, 1024, %s459_s17, [#allocation6], %s2743_s16, %s2743_s16, %s2744_s12  }
  0x92   : > { %s2747_s5 = smov [#allocation10]   ;;  %s2748_s6 = smov [#allocation13]  }
  0x93   : > { %s490_s4 = sshll.u32 %s2747_s5, 4  ;;  %s522_s10 = sshll.u32 %s2748_s6, 4  ;;  %s491_s4 = int_to_ptr.vmem [resolvable:$true] %s490_s4  ;;  %s523_s10 = int_to_ptr.vmem [resolvable:$true] %s522_s10 }
  0x94   : > { %s2542_s20 = scalar_lea.hbm %s3276_s7, 1024 }
  0x95   : > { %p2543_p1 = scmp.ne.s32.totalorder %s3276_s7, %s2542_s20  ;;  %p2549_p0 = scmp.lt.u32.totalorder %s2542_s20, %s3276_s7 }
  0x97   : > { %p2545_p3 = pnand %p2543_p1, %p2899_p8 }
  0x99   : > { %p2546_p13 = pneg %p2545_p3 }
  0x9b   : > { %p2551_p2 = pnand %p2549_p0, %p2546_p13 }
  0x9d   : > { %2554 = shalt.err (!%p2551_p2)
}
  0x9e   : > { %s2555_s17 = scalar_lea.vmem %s491_s4, 1024  ;;  %p2563_p4 = scmp.lt.s32.totalorder %s491_s4, %s491_s4 }
  0x9f   : > { %p2556_p5 = scmp.ne.s32.totalorder %s491_s4, %s2555_s17  ;;  %p2564_p10 = scmp.lt.s32.totalorder %s2555_s17, %s2555_s17 }
  0xa1   : > { %p2558_p7 = pnand %p2556_p5, %p2899_p8  ;;  %p2565_p11 = por %p2564_p10, %p2563_p4 }
  0xa3   : > { %p2559_p9 = pneg %p2558_p7 }
  0xa5   : > { %p2566_p12 = pnand %p2565_p11, %p2559_p9 }
  0xa7   : > { %2569 = shalt.err (!%p2566_p12)
}
  0xa8   : > { %2253 = dma.hbm_to_vmem [thread:$0]  (!%p2883_p6), %s3276_s7, 1024, %s491_s4, [#allocation9], %s2743_s16, %s2743_s16, %s2744_s12  }
  0xa9   : > { %s2570_s23 = scalar_lea.hbm %s3280_s11, 1024 }
  0xaa   : > { %p2571_p1 = scmp.ne.s32.totalorder %s3280_s11, %s2570_s23  ;;  %p2577_p0 = scmp.lt.u32.totalorder %s2570_s23, %s3280_s11 }
  0xac   : > { %p2573_p3 = pnand %p2571_p1, %p2899_p8 }
  0xae   : > { %p2574_p13 = pneg %p2573_p3 }
  0xb0   : > { %p2579_p2 = pnand %p2577_p0, %p2574_p13 }
  0xb2   : > { %2582 = shalt.err (!%p2579_p2)
}
  0xb3   : > { %s2583_s8 = scalar_lea.vmem %s523_s10, 1024  ;;  %p2591_p4 = scmp.lt.s32.totalorder %s523_s10, %s523_s10 }
  0xb4   : > { %p2584_p5 = scmp.ne.s32.totalorder %s523_s10, %s2583_s8  ;;  %p2592_p10 = scmp.lt.s32.totalorder %s2583_s8, %s2583_s8 }
  0xb6   : > { %p2586_p7 = pnand %p2584_p5, %p2899_p8  ;;  %p2593_p11 = por %p2592_p10, %p2591_p4 }
  0xb8   : > { %p2587_p9 = pneg %p2586_p7 }
  0xba   : > { %p2594_p12 = pnand %p2593_p11, %p2587_p9 }
  0xbc   : > { %2597 = shalt.err (!%p2594_p12)
}
  0xbd   : > { %2259 = dma.hbm_to_vmem [thread:$0]  (!%p2883_p6), %s3280_s11, 1024, %s523_s10, [#allocation12], %s2743_s16, %s2743_s16, %s2744_s12  }
  0xbe   : > { %s2749_s21 = smov [#allocation16]   ;;  %s2598_s23 = scalar_lea.hbm %s3284_s15, 1024 }
  0xbf   : > { %s554_s5 = sshll.u32 %s2749_s21, 4  ;;  %p2599_p1 = scmp.ne.s32.totalorder %s3284_s15, %s2598_s23  ;;  %s555_s5 = int_to_ptr.vmem [resolvable:$true] %s554_s5 }
  0xc0   : > { %p2605_p0 = scmp.lt.u32.totalorder %s2598_s23, %s3284_s15 }
  0xc1   : > { %p2601_p3 = pnand %p2599_p1, %p2899_p8 }
  0xc3   : > { %p2602_p13 = pneg %p2601_p3 }
  0xc5   : > { %p2607_p2 = pnand %p2605_p0, %p2602_p13 }
  0xc7   : > { %2610 = shalt.err (!%p2607_p2)
}
  0xc8   : > { %s2611_s10 = scalar_lea.vmem %s555_s5, 1024  ;;  %p2619_p4 = scmp.lt.s32.totalorder %s555_s5, %s555_s5 }
  0xc9   : > { %p2612_p5 = scmp.ne.s32.totalorder %s555_s5, %s2611_s10  ;;  %p2620_p10 = scmp.lt.s32.totalorder %s2611_s10, %s2611_s10 }
  0xcb   : > { %p2614_p7 = pnand %p2612_p5, %p2899_p8  ;;  %p2621_p11 = por %p2620_p10, %p2619_p4 }
  0xcd   : > { %p2615_p9 = pneg %p2614_p7 }
  0xcf   : > { %p2622_p12 = pnand %p2621_p11, %p2615_p9 }
  0xd1   : > { %2625 = shalt.err (!%p2622_p12)
}
  0xd2   : > { %2265 = dma.hbm_to_vmem [thread:$0]  (!%p2883_p6), %s3284_s15, 1024, %s555_s5, [#allocation15], %s2743_s16, %s2743_s16, %s2744_s12  }
  0xd3   : > { %s1861_s1 = sadd.s32 4294967294, %s2738_s27   ;;  %s3082_s18 = sadd.s32 1, %s2738_s27  }
  0xd4   : > { %s41_s17 = ssub.s32 %s2738_s27, %s3082_s18  ;;  %s44_s21 = sadd.s32 1, %s2734_s26 }
  0xd5   : > { %p42_p8 = scmp.eq.s32.totalorder %s41_s17, 0  ;;  %p51_p1 = scmp.ne.s32.totalorder %s2734_s26, %s2730_s25 }
  0xd6   : > { %p52_p3 = scmp.eq.s32.totalorder %s2738_s27, 0  ;;  %p57_p13 = scmp.ne.s32.totalorder %s2730_s25, %s2726_s24 }
  0xd7   : > { %s3093_s6 = scalar_select %p42_p8, %s2734_s26, %s44_s21  }
  0xd8   : > { %p3095_p0 = por %p52_p3, %p51_p1  ;;  %p3310_p2 = scmp.eq.s32.totalorder %s2867_s0, 0 }
  0xd9   : > { %p417_p5 = scmp.eq.s32.totalorder %s2867_s0, 1  ;;  %p423_p7 = scmp.eq.s32.totalorder %s1861_s1, 1 }
  0xda   : > { %p3101_p6 = por %p3310_p2, %p57_p13  ;;  %p2282_p9 = scmp.lt.s32.totalorder %s2738_s27, 2 }
  0xdb   : > { %s571_s12 = sand.u32 1, %s2734_s26   ;;  %p3108_p4 = por %p417_p5, %p51_p1 }
  0xdc   : > { %p3112_p10 = por %p423_p7, %p57_p13  ;;  %s1872_s20 = sshll.u32 %s571_s12, 5 }
  0xdd   : > { %s3312_s5 = scalar_select %p3108_p4, 1, 0 }
  0xde   : > { %s3313_s23 = scalar_select %p3112_p10, 1, 0 }
  0xdf   : > { %s1963_s14 = sshll.u32 %s2738_s27, 9  ;;  %s3314_s10 = sld [smem:[#allocation24_spill]] }
  0xe0   : > { %s575_s4 = scalar_lea.vmem [#allocation2], %s1872_s20  ;;  %p3126_p11 = pnand %p2282_p9, %p3095_p0 }
  0xe1   : > { %s582_s1 = sshll.u32 %s575_s4, 4  ;;  %s3130_s21 = scalar_lea.sflag [#allocation3], %s571_s12  ;;  %s3122_s1 = int_to_ptr.vmem [resolvable:$true] %s582_s1 }
  0xe2   : > { %p2628_p8 = pneg %p3126_p11 }
  0xe5   : > { %s3120_s8 = scalar_lea.hbm %s3314_s10, %s1963_s14  ;;  %s2631_s22 = scalar_lea.hbm %s3314_s10, 1024 }
  0xe6   : > { %s2626_s19 = scalar_lea.hbm %s3120_s8, 512  ;;  %p2632_p13 = scmp.lt.u32.totalorder %s3120_s8, %s3314_s10 }
  0xe7   : > { %p2627_p12 = scmp.ne.s32.totalorder %s3120_s8, %s2626_s19  ;;  %p2633_p0 = scmp.lt.u32.totalorder %s2631_s22, %s2626_s19 }
  0xe8   : > { %p2635_p5 = scmp.lt.u32.totalorder %s2626_s19, %s3120_s8 }
  0xe9   : > { %p2629_p1 = pnand %p2628_p8, %p2627_p12  ;;  %p2634_p2 = por %p2633_p0, %p2632_p13 }
  0xeb   : > { %p2630_p3 = pneg %p2629_p1  ;;  %p2636_p7 = por %p2635_p5, %p2634_p2 }
  0xed   : > { %p2637_p9 = pnand %p2636_p7, %p2630_p3 }
  0xef   : > { %2640 = shalt.err (!%p2637_p9)
}
  0xf0   : > { %s2641_s12 = scalar_lea.vmem %s3122_s1, 512  ;;  %s2750_s20 = smov [#allocation2]  }
  0xf1   : > { %p2642_p12 = scmp.ne.s32.totalorder %s3122_s1, %s2641_s12  ;;  %s2646_s14 = sshll.u32 %s2750_s20, 4  ;;  %s2647_s14 = int_to_ptr.vmem [resolvable:$false] %s2646_s14 }
  0xf2   : > { %s2648_s29 = scalar_lea.vmem %s2647_s14, 1024  ;;  %p2649_p4 = scmp.lt.s32.totalorder %s3122_s1, %s2647_s14 }
  0xf3   : > { %p2644_p1 = pnand %p2642_p12, %p2628_p8  ;;  %p2650_p13 = scmp.lt.s32.totalorder %s2648_s29, %s2641_s12 }
  0xf5   : > { %p2645_p10 = pneg %p2644_p1  ;;  %p2651_p0 = por %p2650_p13, %p2649_p4 }
  0xf7   : > { %p2652_p2 = pnand %p2651_p0, %p2645_p10 }
  0xf9   : > { %2655 = shalt.err (!%p2652_p2)
}
  0xfa   : > { %s2751_s19 = smov 128   ;;  %s2752_s22 = smov 8  }
  0xfb   : > { %2269 = dma.hbm_to_vmem [thread:$0]  (!%p3126_p11), %s3120_s8, 512, %s3122_s1, %s3130_s21, %s2751_s19, %s2751_s19, %s2752_s22  }
  0xfc   : > { %p3316_p8 = scmp.ne.s32.totalorder %s3304_s30, 0 }
  0xfd   : > { %s3161_s4 = sand.u32 (!%p3316_p8), 1, %s2730_s25  }
  0xfe   : > { %594 = sbr.rel (%p3316_p8) target bundleno = 2094 (0x82e), region = 88  ;;  %s1876_s12 = sshll.u32 (!%p3316_p8), %s3161_s4, 5 }
  0xff   : > { %s597_s20 = scalar_lea.sflag (!%p3316_p8), [#allocation3], %s3161_s4  ;;  %s3167_s14 = scalar_lea.vmem (!%p3316_p8), [#allocation2], %s1876_s12 }
 0x105   : > { %2701 = dma.done.wait (%p3101_p6), %s597_s20, 512  }
 0x106   : > { %2703 = vsyncadd (%p3101_p6), %s597_s20, 4294966784  ;;  %p3317_p4 = scmp.eq.s32.totalorder %s2867_s0, 0 }
 0x108   : > { %2705 = dma.done.wait (%p3317_p4), [#allocation6], 2048   ;;  %p3318_p10 = pmov %p3317_p4 }
 0x109   : > { %p3319_p11 = pmov %p3317_p4 }
 0x10a   : > { %2707 = vsyncadd (%p3318_p10), [#allocation6], 4294965248 }
 0x10b   : > { %2709 = dma.done.wait (%p3319_p11), [#allocation9], 2048   ;;  %p3320_p3 = pmov %p3317_p4 }
 0x10d   : > { %2711 = vsyncadd (%p3320_p3), [#allocation9], 4294965248  ;;  %p3321_p5 = pmov %p3320_p3 }
 0x10e   : > { %p3322_p7 = pmov %p3320_p3 }
 0x10f   : > { %2713 = dma.done.wait (%p3321_p5), [#allocation12], 2048  }
 0x110   : > { %2715 = vsyncadd (%p3322_p7), [#allocation12], 4294965248  ;;  %p3323_p6 = pmov %p3320_p3 }
 0x111   : > { %p3324_p9 = pmov %p3320_p3 }
 0x112   : > { %2717 = dma.done.wait (%p3323_p6), [#allocation15], 2048  }
 0x113   : > { %2719 = vsyncadd (%p3324_p9), [#allocation15], 4294965248  ;;  %v2338_v0 = vld [vmem:[#allocation5] sm:$0xff]   ;;  %v2339_v1 = vld [vmem:[#allocation5 + $0x8] sm:$0xff]   ;;  %s3325_s17 = sld [smem:[#allocation26_spill]]  ;;  %s3326_s19 = sld [smem:[#allocation28_spill]] }
 0x114   : > { %2045 = vmatprep.subr.bf16.mxu0 %v2338_v0  ;;  %v2340_v2 = vld [vmem:[#allocation5 + $0x10] sm:$0xff]   ;;  %v2341_v3 = vld [vmem:[#allocation5 + $0x18] sm:$0xff]   ;;  %v686_v4 = vld [vmem:[%s3167_s14] sm:$0xff]  ;;  %s3328_s8 = sld [smem:[#allocation30_spill]]  ;;  %s3329_s21 = sld [smem:[#allocation31_spill]] }
 0x115   : > { %2046 = vmatpush3.bf16.msra.mxu0 %v2338_v0  ;;  %v687_v5 = vld [vmem:[%s3167_s14 + $0x8] sm:$0xff]  ;;  %v2346_v7 = vld [vmem:[#allocation7] sm:$0xff]   ;;  %v2348_v10 = vld [vmem:[#allocation7 + $0x10] sm:$0xff]   ;;  %s3330_s22 = sld [smem:[#allocation32_spill]]  ;;  %s3331_s30 = sld [smem:[#allocation33_spill]] }
 0x116   : > { %2047 = vmatprep.subr.bf16.mxu0 %v2339_v1  ;;  %v690_v6 = vpack.c.bf16 %v687_v5, %v686_v4  ;;  %v2347_v8 = vld [vmem:[#allocation7 + $0x8] sm:$0xff]   ;;  %v2342_v9 = vld [vmem:[#allocation5 + $0x20] sm:$0xff]   ;;  %2065 = vmatprep.subr.bf16.mxu1 %v2346_v7  ;;  %v2349_v12 = vld [vmem:[#allocation7 + $0x18] sm:$0xff]   ;;  %s682_s16 = scalar_lea.vmem [#allocation17], %s1876_s12  ;;  %s1964_s1 = sshll.u32 %s2867_s0, 9 }
 0x117   : > { %2066 = vmatpush3.bf16.msra.mxu1 %v2346_v7  ;;  %v2343_v11 = vld [vmem:[#allocation5 + $0x28] sm:$0xff]   ;;  %v2344_v13 = vld [vmem:[#allocation5 + $0x30] sm:$0xff]   ;;  %v2350_v14 = vld [vmem:[#allocation7 + $0x20] sm:$0xff]   ;;  %s3332_s12 = sld [smem:[#allocation34_spill]]  ;;  %s1699_s0 = scalar_lea.sflag [#allocation4], %s3161_s4 }
 0x118   : > { %2061 = vmatprep.mubr.bf16.mxu0 %v690_v6  ;;  %2067 = vmatprep.subr.bf16.mxu1 %v2347_v8  ;;  %v2345_v15 = vld [vmem:[#allocation5 + $0x38] sm:$0xff]   ;;  %v2351_v16 = vld [vmem:[#allocation7 + $0x28] sm:$0xff]   ;;  %v688_v17 = vld [vmem:[%s3167_s14 + $0x10] sm:$0xff]  ;;  %p3333_p1 = scmp.ne.s32.totalorder %s3312_s5, 0 }
 0x119   : > { %2048 = vmatpush3.bf16.msra.mxu0 %v2339_v1  ;;  %v689_v18 = vld [vmem:[%s3167_s14 + $0x18] sm:$0xff]  ;;  %v2352_v20 = vld [vmem:[#allocation7 + $0x30] sm:$0xff]   ;;  %v2354_v22 = vld [vmem:[#allocation8] sm:$0xff]   ;;  %s3327_s14 = sld [smem:[#allocation29_spill]] }
 0x11a   : > { %2049 = vmatprep.subr.bf16.mxu0 %v2340_v2  ;;  %v691_v19 = vpack.c.bf16 %v689_v18, %v688_v17  ;;  %v2353_v21 = vld [vmem:[#allocation7 + $0x38] sm:$0xff]   ;;  %v2355_v23 = vld [vmem:[#allocation8 + $0x8] sm:$0xff]   ;;  %v2356_v24 = vld [vmem:[#allocation8 + $0x10] sm:$0xff]  }
 0x11b   : > { %2068 = vmatpush3.bf16.msra.mxu1 %v2347_v8  ;;  %v2357_v25 = vld [vmem:[#allocation8 + $0x18] sm:$0xff]   ;;  %v2358_v26 = vld [vmem:[#allocation8 + $0x20] sm:$0xff]   ;;  %v2359_v27 = vld [vmem:[#allocation8 + $0x28] sm:$0xff]  }
 0x11c   : > { %2069 = vmatprep.subr.bf16.mxu1 %v2348_v10  ;;  %v1886_v28 = vld [vmem:[%s3271_s2] ss:$0 sm:$0xff]  ;;  %v2360_v43 = vld [vmem:[#allocation8 + $0x30] sm:$0xff]   ;;  %v2361_v44 = vld [vmem:[#allocation8 + $0x38] sm:$0xff]  }
 0x11d   : > { %2050 = vmatpush3.bf16.msra.mxu0 %v2340_v2  ;;  %v2362_v45 = vld [vmem:[#allocation10] sm:$0xff]   ;;  %v2363_v46 = vld [vmem:[#allocation10 + $0x8] sm:$0xff]   ;;  %v2364_v47 = vld [vmem:[#allocation10 + $0x10] sm:$0xff]   ;;  %s3225_s29 = scalar_lea.hbm %s3332_s12, %s1964_s1 }
 0x11e   : > { %2051 = vmatprep.subr.bf16.mxu0 %v2341_v3  ;;  %v2365_v48 = vld [vmem:[#allocation10 + $0x18] sm:$0xff]   ;;  %v2366_v49 = vld [vmem:[#allocation10 + $0x20] sm:$0xff]   ;;  %v2367_v50 = vld [vmem:[#allocation10 + $0x28] sm:$0xff]  }
 0x11f   : > { %2070 = vmatpush3.bf16.msra.mxu1 %v2348_v10  ;;  %v1895_v51 = vld [vmem:[%s3325_s17] ss:$0 sm:$0xff]  ;;  %v2368_v2 = vld [vmem:[#allocation10 + $0x30] sm:$0xff]   ;;  %v2371_v5 = vld [vmem:[#allocation11 + $0x8] sm:$0xff]  }
 0x120   : > { %2071 = vmatprep.subr.bf16.mxu1 %v2349_v12  ;;  %v2370_v4 = vld [vmem:[#allocation11] sm:$0xff]   ;;  %v2372_v6 = vld [vmem:[#allocation11 + $0x10] sm:$0xff]   ;;  %v2373_v7 = vld [vmem:[#allocation11 + $0x18] sm:$0xff]  }
 0x121   : > { %2052 = vmatpush3.bf16.msra.mxu0 %v2341_v3  ;;  %v2369_v3 = vld [vmem:[#allocation10 + $0x38] sm:$0xff]   ;;  %v2374_v8 = vld [vmem:[#allocation11 + $0x20] sm:$0xff]  }
 0x122   : > { %2053 = vmatprep.subr.bf16.mxu0 %v2342_v9  ;;  %v1904_v10 = vld [vmem:[%s3326_s19] ss:$0 sm:$0xff] }
 0x123   : > { %2072 = vmatpush3.bf16.msra.mxu1 %v2349_v12 }
 0x124   : > { %2073 = vmatprep.subr.bf16.mxu1 %v2350_v14 }
 0x125   : > { %2054 = vmatpush3.bf16.msra.mxu0 %v2342_v9  ;;  %v2375_v9 = vld [vmem:[#allocation11 + $0x28] sm:$0xff]  }
 0x126   : > { %2055 = vmatprep.subr.bf16.mxu0 %v2343_v11 }
 0x127   : > { %2074 = vmatpush3.bf16.msra.mxu1 %v2350_v14 }
 0x128   : > { %2075 = vmatprep.subr.bf16.mxu1 %v2351_v16 }
 0x129   : > { %2056 = vmatpush3.bf16.msra.mxu0 %v2343_v11 }
 0x12a   : > { %2057 = vmatprep.subr.bf16.mxu0 %v2344_v13 }
 0x12b   : > { %2076 = vmatpush3.bf16.msra.mxu1 %v2351_v16 }
 0x12c   : > { %2077 = vmatprep.subr.bf16.mxu1 %v2352_v20 }
 0x12d   : > { %2058 = vmatpush3.bf16.msra.mxu0 %v2344_v13 }
 0x12e   : > { %2059 = vmatprep.subr.bf16.mxu0 %v2345_v15 }
 0x12f   : > { %2078 = vmatpush3.bf16.msra.mxu1 %v2352_v20 }
 0x130   : > { %2079 = vmatprep.subr.bf16.mxu1 %v2353_v21 }
 0x131   : > { %2060 = vmatpush3.bf16.msra.mxu0 %v2345_v15 }
 0x132   : > { %2085 = vmatprep.subr.bf16.mxu0 %v2354_v22 }
 0x133   : > { %2080 = vmatpush3.bf16.msra.mxu1 %v2353_v21 }
 0x134   : > { %2062 = vmatmul.mubr.bf16.vlgmr.msra.gmra.mrb[0].mxu0 %v691_v19  ;;  %2105 = vmatprep.subr.bf16.mxu1 %v2362_v45 }
 0x135   : > { %2086 = vmatpush3.bf16.msra.mxu0 %v2354_v22 }
 0x136   : > { %2087 = vmatprep.subr.bf16.mxu0 %v2355_v23 }
 0x139   : > { %2088 = vmatpush3.bf16.msra.mxu0 %v2355_v23 }
 0x13a   : > { %2089 = vmatprep.subr.bf16.mxu0 %v2356_v24 }
 0x13d   : > { %2090 = vmatpush3.bf16.msra.mxu0 %v2356_v24 }
 0x13e   : > { %2091 = vmatprep.subr.bf16.mxu0 %v2357_v25 }
 0x141   : > { %2092 = vmatpush3.bf16.msra.mxu0 %v2357_v25  ;;  %v2376_v25 = vld [vmem:[#allocation11 + $0x30] sm:$0xff]  }
 0x142   : > { %2093 = vmatprep.subr.bf16.mxu0 %v2358_v26 }
 0x145   : > { %2094 = vmatpush3.bf16.msra.mxu0 %v2358_v26  ;;  %v2377_v26 = vld [vmem:[#allocation11 + $0x38] sm:$0xff]  }
 0x146   : > { %2095 = vmatprep.subr.bf16.mxu0 %v2359_v27 }
 0x149   : > { %2096 = vmatpush3.bf16.msra.mxu0 %v2359_v27  ;;  %v2378_v27 = vld [vmem:[#allocation13] sm:$0xff]  }
 0x14a   : > { %2097 = vmatprep.subr.bf16.mxu0 %v2360_v43 }
 0x14d   : > { %2098 = vmatpush3.bf16.msra.mxu0 %v2360_v43 }
 0x14e   : > { %2099 = vmatprep.subr.bf16.mxu0 %v2361_v44 }
 0x151   : > { %2100 = vmatpush3.bf16.msra.mxu0 %v2361_v44 }
 0x152   : > { %2125 = vmatprep.subr.bf16.mxu0 %v2370_v4 }
 0x207   : > { %v2063_v29 = vpop.f32.mrb[0].mxu0 }
 0x208   : > { %v806_v30 = vadd.f32 %v2063_v29, %v1886_v28  ;;  %v797_v31 = vpop.f32.mrb[1].mxu0  ;;  %v2380_v29 = vld [vmem:[#allocation13 + $0x10] sm:$0xff]  }
 0x209   : > { %v798_v32 = vadd.f32 %v1886_v28, %v797_v31  ;;  %v2064_v33 = vpop.f32.mrb[2].mxu0  ;;  %v2382_v31 = vld [vmem:[#allocation13 + $0x20] sm:$0xff]  }
 0x20a   : > { %v809_v34 = vadd.f32 %v2064_v33, %v1886_v28  ;;  %v800_v35 = vpop.f32.mrb[3].mxu0  ;;  %v814_v37 = vmax.f32 %v806_v30, 0.0  ;;  %v2381_v30 = vld [vmem:[#allocation13 + $0x18] sm:$0xff]   ;;  %v1913_v33 = vld [vmem:[%s3327_s14] ss:$0 sm:$0xff] }
 0x20b   : > { %v801_v36 = vadd.f32 %v1886_v28, %v800_v35  ;;  %v812_v39 = vmax.f32 %v798_v32, 0.0  ;;  %v2379_v28 = vld [vmem:[#allocation13 + $0x8] sm:$0xff]  }
 0x20c   : > { %v815_v38 = vmax.f32 %v809_v34, 0.0  ;;  %v2383_v32 = vld [vmem:[#allocation13 + $0x28] sm:$0xff]  }
 0x20d   : > { %v813_v40 = vmax.f32 %v801_v36, 0.0 }
 0x20e   : > { %v817_v41 = vpack.c.bf16 %v815_v38, %v814_v37 }
 0x20f   : > { %v816_v42 = vpack.c.bf16 %v813_v40, %v812_v39 }
 0x211   : > { %2081 = vmatprep.mubr.bf16.mxu1 %v816_v42 }
 0x212   : > { %2082 = vmatmul.mubr.bf16.vlgmr.msra.gmra.mrb[0].mxu1 %v817_v41 }
 0x213   : > { %2106 = vmatpush3.bf16.msra.mxu1 %v2362_v45 }
 0x214   : > { %2107 = vmatprep.subr.bf16.mxu1 %v2363_v46 }
 0x217   : > { %2108 = vmatpush3.bf16.msra.mxu1 %v2363_v46 }
 0x218   : > { %2109 = vmatprep.subr.bf16.mxu1 %v2364_v47 }
 0x21b   : > { %2110 = vmatpush3.bf16.msra.mxu1 %v2364_v47 }
 0x21c   : > { %2111 = vmatprep.subr.bf16.mxu1 %v2365_v48 }
 0x21f   : > { %2112 = vmatpush3.bf16.msra.mxu1 %v2365_v48  ;;  %v2384_v48 = vld [vmem:[#allocation13 + $0x30] sm:$0xff]  }
 0x220   : > { %2113 = vmatprep.subr.bf16.mxu1 %v2366_v49 }
 0x223   : > { %2114 = vmatpush3.bf16.msra.mxu1 %v2366_v49  ;;  %v2385_v49 = vld [vmem:[#allocation13 + $0x38] sm:$0xff]  }
 0x224   : > { %2115 = vmatprep.subr.bf16.mxu1 %v2367_v50 }
 0x227   : > { %2116 = vmatpush3.bf16.msra.mxu1 %v2367_v50  ;;  %v2386_v50 = vld [vmem:[#allocation14] sm:$0xff]  }
 0x228   : > { %2117 = vmatprep.subr.bf16.mxu1 %v2368_v2 }
 0x22b   : > { %2118 = vmatpush3.bf16.msra.mxu1 %v2368_v2 }
 0x22c   : > { %2119 = vmatprep.subr.bf16.mxu1 %v2369_v3 }
 0x22f   : > { %2120 = vmatpush3.bf16.msra.mxu1 %v2369_v3 }
 0x230   : > { %2145 = vmatprep.subr.bf16.mxu1 %v2378_v27 }
 0x2e5   : > { %v2083_v52 = vpop.f32.mrb[0].mxu1 }
 0x2e6   : > { %v932_v53 = vadd.f32 %v2083_v52, %v1895_v51  ;;  %v923_v54 = vpop.f32.mrb[1].mxu1  ;;  %v2388_v52 = vld [vmem:[#allocation14 + $0x10] sm:$0xff]  }
 0x2e7   : > { %v924_v55 = vadd.f32 %v1895_v51, %v923_v54  ;;  %v2084_v56 = vpop.f32.mrb[2].mxu1  ;;  %v2390_v54 = vld [vmem:[#allocation14 + $0x20] sm:$0xff]  }
 0x2e8   : > { %v935_v57 = vadd.f32 %v2084_v56, %v1895_v51  ;;  %v926_v58 = vpop.f32.mrb[3].mxu1  ;;  %v940_v60 = vmax.f32 %v932_v53, 0.0  ;;  %v2389_v53 = vld [vmem:[#allocation14 + $0x18] sm:$0xff]   ;;  %v1922_v56 = vld [vmem:[%s3328_s8] ss:$0 sm:$0xff]  ;;  %s1712_s8 = sshll.u32 %s682_s16, 4  ;;  %s3220_s8 = int_to_ptr.vmem [resolvable:$true] %s1712_s8 }
 0x2e9   : > { %v927_v59 = vadd.f32 %v1895_v51, %v926_v58  ;;  %v938_v62 = vmax.f32 %v924_v55, 0.0  ;;  %v2387_v51 = vld [vmem:[#allocation14 + $0x8] sm:$0xff]   ;;  %s2656_s19 = scalar_lea.vmem %s3220_s8, 512 }
 0x2ea   : > { %v941_v61 = vmax.f32 %v935_v57, 0.0  ;;  %v2391_v55 = vld [vmem:[#allocation14 + $0x28] sm:$0xff]   ;;  %p2657_p12 = scmp.ne.s32.totalorder %s3220_s8, %s2656_s19 }
 0x2eb   : > { %v939_v63 = vmax.f32 %v927_v59, 0.0 }
 0x2ec   : > { %v943_v0 = vpack.c.bf16 %v941_v61, %v940_v60  ;;  %p2658_p13 = pnand %p2657_p12, %p3333_p1 }
 0x2ed   : > { %v942_v1 = vpack.c.bf16 %v939_v63, %v938_v62 }
 0x2ee   : > { %p2659_p0 = pneg %p2658_p13 }
 0x2ef   : > { %2101 = vmatprep.mubr.bf16.mxu0 %v942_v1 }
 0x2f0   : > { %2102 = vmatmul.mubr.bf16.vlgmr.msra.gmra.mrb[4].mxu0 %v943_v0 }
 0x2f1   : > { %2126 = vmatpush3.bf16.msra.mxu0 %v2370_v4 }
 0x2f2   : > { %2127 = vmatprep.subr.bf16.mxu0 %v2371_v5 }
 0x2f5   : > { %2128 = vmatpush3.bf16.msra.mxu0 %v2371_v5 }
 0x2f6   : > { %2129 = vmatprep.subr.bf16.mxu0 %v2372_v6 }
 0x2f9   : > { %2130 = vmatpush3.bf16.msra.mxu0 %v2372_v6 }
 0x2fa   : > { %2131 = vmatprep.subr.bf16.mxu0 %v2373_v7 }
 0x2fd   : > { %2132 = vmatpush3.bf16.msra.mxu0 %v2373_v7  ;;  %v2392_v7 = vld [vmem:[#allocation14 + $0x30] sm:$0xff]  }
 0x2fe   : > { %2133 = vmatprep.subr.bf16.mxu0 %v2374_v8 }
 0x301   : > { %2134 = vmatpush3.bf16.msra.mxu0 %v2374_v8  ;;  %v2393_v8 = vld [vmem:[#allocation14 + $0x38] sm:$0xff]  }
 0x302   : > { %2135 = vmatprep.subr.bf16.mxu0 %v2375_v9 }
 0x305   : > { %2136 = vmatpush3.bf16.msra.mxu0 %v2375_v9  ;;  %v2394_v9 = vld [vmem:[#allocation16] sm:$0xff]  }
 0x306   : > { %2137 = vmatprep.subr.bf16.mxu0 %v2376_v25 }
 0x309   : > { %2138 = vmatpush3.bf16.msra.mxu0 %v2376_v25 }
 0x30a   : > { %2139 = vmatprep.subr.bf16.mxu0 %v2377_v26 }
 0x30d   : > { %2140 = vmatpush3.bf16.msra.mxu0 %v2377_v26 }
 0x30e   : > { %2165 = vmatprep.subr.bf16.mxu0 %v2386_v50 }
 0x3c3   : > { %v2103_v11 = vpop.f32.mrb[4].mxu0 }
 0x3c4   : > { %v1058_v12 = vadd.f32 %v2103_v11, %v1904_v10  ;;  %v1049_v13 = vpop.f32.mrb[5].mxu0  ;;  %v2396_v11 = vld [vmem:[#allocation16 + $0x10] sm:$0xff]  }
 0x3c5   : > { %v1050_v14 = vadd.f32 %v1904_v10, %v1049_v13  ;;  %v2104_v15 = vpop.f32.mrb[6].mxu0  ;;  %v2398_v13 = vld [vmem:[#allocation16 + $0x20] sm:$0xff]  }
 0x3c6   : > { %v1061_v16 = vadd.f32 %v2104_v15, %v1904_v10  ;;  %v1052_v17 = vpop.f32.mrb[7].mxu0  ;;  %v1066_v19 = vmax.f32 %v1058_v12, 0.0  ;;  %v2397_v12 = vld [vmem:[#allocation16 + $0x18] sm:$0xff]   ;;  %v1931_v15 = vld [vmem:[%s3329_s21] ss:$0 sm:$0xff] }
 0x3c7   : > { %v1053_v18 = vadd.f32 %v1904_v10, %v1052_v17  ;;  %v1064_v21 = vmax.f32 %v1050_v14, 0.0  ;;  %v2395_v10 = vld [vmem:[#allocation16 + $0x8] sm:$0xff]  }
 0x3c8   : > { %v1067_v20 = vmax.f32 %v1061_v16, 0.0  ;;  %v2399_v14 = vld [vmem:[#allocation16 + $0x28] sm:$0xff]  }
 0x3c9   : > { %v1065_v22 = vmax.f32 %v1053_v18, 0.0 }
 0x3ca   : > { %v1069_v23 = vpack.c.bf16 %v1067_v20, %v1066_v19 }
 0x3cb   : > { %v1068_v24 = vpack.c.bf16 %v1065_v22, %v1064_v21 }
 0x3cd   : > { %2121 = vmatprep.mubr.bf16.mxu1 %v1068_v24 }
 0x3ce   : > { %2122 = vmatmul.mubr.bf16.vlgmr.msra.gmra.mrb[4].mxu1 %v1069_v23 }
 0x3cf   : > { %2146 = vmatpush3.bf16.msra.mxu1 %v2378_v27 }
 0x3d0   : > { %2147 = vmatprep.subr.bf16.mxu1 %v2379_v28 }
 0x3d3   : > { %2148 = vmatpush3.bf16.msra.mxu1 %v2379_v28 }
 0x3d4   : > { %2149 = vmatprep.subr.bf16.mxu1 %v2380_v29 }
 0x3d7   : > { %2150 = vmatpush3.bf16.msra.mxu1 %v2380_v29 }
 0x3d8   : > { %2151 = vmatprep.subr.bf16.mxu1 %v2381_v30 }
 0x3db   : > { %2152 = vmatpush3.bf16.msra.mxu1 %v2381_v30  ;;  %v2400_v30 = vld [vmem:[#allocation16 + $0x30] sm:$0xff]  }
 0x3dc   : > { %2153 = vmatprep.subr.bf16.mxu1 %v2382_v31 }
 0x3df   : > { %2154 = vmatpush3.bf16.msra.mxu1 %v2382_v31  ;;  %v2401_v31 = vld [vmem:[#allocation16 + $0x38] sm:$0xff]  }
 0x3e0   : > { %2155 = vmatprep.subr.bf16.mxu1 %v2383_v32 }
 0x3e3   : > { %2156 = vmatpush3.bf16.msra.mxu1 %v2383_v32  ;;  %v1940_v32 = vld [vmem:[%s3330_s22] ss:$0 sm:$0xff]  ;;  %s2753_s22 = smov [#allocation17]  }
 0x3e4   : > { %2157 = vmatprep.subr.bf16.mxu1 %v2384_v48  ;;  %s2660_s20 = sshll.u32 %s2753_s22, 4  ;;  %s2661_s20 = int_to_ptr.vmem [resolvable:$false] %s2660_s20 }
 0x3e5   : > { %s2662_s14 = scalar_lea.vmem %s2661_s20, 1024  ;;  %p2663_p2 = scmp.lt.s32.totalorder %s3220_s8, %s2661_s20 }
 0x3e6   : > { %p2664_p8 = scmp.lt.s32.totalorder %s2662_s14, %s2656_s19 }
 0x3e7   : > { %2158 = vmatpush3.bf16.msra.mxu1 %v2384_v48 }
 0x3e8   : > { %2159 = vmatprep.subr.bf16.mxu1 %v2385_v49  ;;  %p2665_p4 = por %p2664_p8, %p2663_p2 }
 0x3ea   : > { %p2666_p10 = pnand %p2665_p4, %p2659_p0 }
 0x3eb   : > { %2160 = vmatpush3.bf16.msra.mxu1 %v2385_v49 }
 0x3ec   : > { %2185 = vmatprep.subr.bf16.mxu1 %v2394_v9 }
 0x4a1   : > { %v2123_v34 = vpop.f32.mrb[4].mxu1 }
 0x4a2   : > { %v1184_v35 = vadd.f32 %v2123_v34, %v1913_v33  ;;  %v1175_v36 = vpop.f32.mrb[5].mxu1 }
 0x4a3   : > { %v1176_v37 = vadd.f32 %v1913_v33, %v1175_v36  ;;  %v2124_v38 = vpop.f32.mrb[6].mxu1 }
 0x4a4   : > { %v1187_v39 = vadd.f32 %v2124_v38, %v1913_v33  ;;  %v1178_v40 = vpop.f32.mrb[7].mxu1  ;;  %v1192_v42 = vmax.f32 %v1184_v35, 0.0 }
 0x4a5   : > { %v1179_v41 = vadd.f32 %v1913_v33, %v1178_v40  ;;  %v1190_v44 = vmax.f32 %v1176_v37, 0.0 }
 0x4a6   : > { %v1193_v43 = vmax.f32 %v1187_v39, 0.0 }
 0x4a7   : > { %v1191_v45 = vmax.f32 %v1179_v41, 0.0 }
 0x4a8   : > { %v1195_v46 = vpack.c.bf16 %v1193_v43, %v1192_v42 }
 0x4a9   : > { %v1194_v47 = vpack.c.bf16 %v1191_v45, %v1190_v44 }
 0x4ab   : > { %2141 = vmatprep.mubr.bf16.mxu0 %v1194_v47  ;;  %v1949_v47 = vld [vmem:[%s3331_s30] ss:$0 sm:$0xff] }
 0x4ac   : > { %2142 = vmatmul.mubr.bf16.vlgmr.msra.gmra.mrb[8].mxu0 %v1195_v46 }
 0x4ad   : > { %2166 = vmatpush3.bf16.msra.mxu0 %v2386_v50 }
 0x4ae   : > { %2167 = vmatprep.subr.bf16.mxu0 %v2387_v51 }
 0x4b1   : > { %2168 = vmatpush3.bf16.msra.mxu0 %v2387_v51 }
 0x4b2   : > { %2169 = vmatprep.subr.bf16.mxu0 %v2388_v52 }
 0x4b5   : > { %2170 = vmatpush3.bf16.msra.mxu0 %v2388_v52 }
 0x4b6   : > { %2171 = vmatprep.subr.bf16.mxu0 %v2389_v53 }
 0x4b9   : > { %2172 = vmatpush3.bf16.msra.mxu0 %v2389_v53 }
 0x4ba   : > { %2173 = vmatprep.subr.bf16.mxu0 %v2390_v54 }
 0x4bd   : > { %2174 = vmatpush3.bf16.msra.mxu0 %v2390_v54 }
 0x4be   : > { %2175 = vmatprep.subr.bf16.mxu0 %v2391_v55 }
 0x4c1   : > { %2176 = vmatpush3.bf16.msra.mxu0 %v2391_v55 }
 0x4c2   : > { %2177 = vmatprep.subr.bf16.mxu0 %v2392_v7 }
 0x4c5   : > { %2178 = vmatpush3.bf16.msra.mxu0 %v2392_v7 }
 0x4c6   : > { %2179 = vmatprep.subr.bf16.mxu0 %v2393_v8 }
 0x4c9   : > { %2180 = vmatpush3.bf16.msra.mxu0 %v2393_v8 }
 0x57f   : > { %v2143_v57 = vpop.f32.mrb[8].mxu0 }
 0x580   : > { %v1310_v58 = vadd.f32 %v2143_v57, %v1922_v56  ;;  %v1301_v59 = vpop.f32.mrb[9].mxu0 }
 0x581   : > { %v1302_v60 = vadd.f32 %v1922_v56, %v1301_v59  ;;  %v2144_v61 = vpop.f32.mrb[10].mxu0 }
 0x582   : > { %v1313_v62 = vadd.f32 %v2144_v61, %v1922_v56  ;;  %v1304_v63 = vpop.f32.mrb[11].mxu0  ;;  %v1318_v1 = vmax.f32 %v1310_v58, 0.0 }
 0x583   : > { %v1305_v0 = vadd.f32 %v1922_v56, %v1304_v63  ;;  %v1316_v3 = vmax.f32 %v1302_v60, 0.0 }
 0x584   : > { %v1319_v2 = vmax.f32 %v1313_v62, 0.0 }
 0x585   : > { %v1317_v4 = vmax.f32 %v1305_v0, 0.0 }
 0x586   : > { %v1321_v5 = vpack.c.bf16 %v1319_v2, %v1318_v1 }
 0x587   : > { %v1320_v6 = vpack.c.bf16 %v1317_v4, %v1316_v3 }
 0x589   : > { %2161 = vmatprep.mubr.bf16.mxu1 %v1320_v6 }
 0x58a   : > { %2162 = vmatmul.mubr.bf16.vlgmr.msra.gmra.mrb[8].mxu1 %v1321_v5 }
 0x58b   : > { %2186 = vmatpush3.bf16.msra.mxu1 %v2394_v9 }
 0x58c   : > { %2187 = vmatprep.subr.bf16.mxu1 %v2395_v10 }
 0x58f   : > { %2188 = vmatpush3.bf16.msra.mxu1 %v2395_v10 }
 0x590   : > { %2189 = vmatprep.subr.bf16.mxu1 %v2396_v11 }
 0x593   : > { %2190 = vmatpush3.bf16.msra.mxu1 %v2396_v11 }
 0x594   : > { %2191 = vmatprep.subr.bf16.mxu1 %v2397_v12 }
 0x597   : > { %2192 = vmatpush3.bf16.msra.mxu1 %v2397_v12 }
 0x598   : > { %2193 = vmatprep.subr.bf16.mxu1 %v2398_v13 }
 0x59b   : > { %2194 = vmatpush3.bf16.msra.mxu1 %v2398_v13 }
 0x59c   : > { %2195 = vmatprep.subr.bf16.mxu1 %v2399_v14 }
 0x59f   : > { %2196 = vmatpush3.bf16.msra.mxu1 %v2399_v14 }
 0x5a0   : > { %2197 = vmatprep.subr.bf16.mxu1 %v2400_v30 }
 0x5a3   : > { %2198 = vmatpush3.bf16.msra.mxu1 %v2400_v30 }
 0x5a4   : > { %2199 = vmatprep.subr.bf16.mxu1 %v2401_v31 }
 0x5a7   : > { %2200 = vmatpush3.bf16.msra.mxu1 %v2401_v31 }
 0x65d   : > { %v2163_v16 = vpop.f32.mrb[8].mxu1 }
 0x65e   : > { %v1436_v17 = vadd.f32 %v2163_v16, %v1931_v15  ;;  %v1427_v18 = vpop.f32.mrb[9].mxu1 }
 0x65f   : > { %v1428_v19 = vadd.f32 %v1931_v15, %v1427_v18  ;;  %v2164_v20 = vpop.f32.mrb[10].mxu1 }
 0x660   : > { %v1439_v21 = vadd.f32 %v2164_v20, %v1931_v15  ;;  %v1430_v22 = vpop.f32.mrb[11].mxu1  ;;  %v1444_v24 = vmax.f32 %v1436_v17, 0.0 }
 0x661   : > { %v1431_v23 = vadd.f32 %v1931_v15, %v1430_v22  ;;  %v1442_v26 = vmax.f32 %v1428_v19, 0.0 }
 0x662   : > { %v1445_v25 = vmax.f32 %v1439_v21, 0.0 }
 0x663   : > { %v1443_v27 = vmax.f32 %v1431_v23, 0.0 }
 0x664   : > { %v1447_v28 = vpack.c.bf16 %v1445_v25, %v1444_v24 }
 0x665   : > { %v1446_v29 = vpack.c.bf16 %v1443_v27, %v1442_v26 }
 0x667   : > { %2181 = vmatprep.mubr.bf16.mxu0 %v1446_v29 }
 0x668   : > { %2182 = vmatmul.mubr.bf16.vlgmr.msra.gmra.mrb[12].mxu0 %v1447_v28 }
 0x73b   : > { %v2183_v33 = vpop.f32.mrb[12].mxu0 }
 0x73c   : > { %v1562_v34 = vadd.f32 %v2183_v33, %v1940_v32  ;;  %v1553_v35 = vpop.f32.mrb[13].mxu0 }
 0x73d   : > { %v1554_v36 = vadd.f32 %v1940_v32, %v1553_v35  ;;  %v2184_v37 = vpop.f32.mrb[14].mxu0 }
 0x73e   : > { %v1565_v38 = vadd.f32 %v2184_v37, %v1940_v32  ;;  %v1556_v39 = vpop.f32.mrb[15].mxu0  ;;  %v1570_v41 = vmax.f32 %v1562_v34, 0.0 }
 0x73f   : > { %v1557_v40 = vadd.f32 %v1940_v32, %v1556_v39  ;;  %v1568_v43 = vmax.f32 %v1554_v36, 0.0 }
 0x740   : > { %v1571_v42 = vmax.f32 %v1565_v38, 0.0 }
 0x741   : > { %v1569_v44 = vmax.f32 %v1557_v40, 0.0 }
 0x742   : > { %v1573_v45 = vpack.c.bf16 %v1571_v42, %v1570_v41 }
 0x743   : > { %v1572_v46 = vpack.c.bf16 %v1569_v44, %v1568_v43 }
 0x745   : > { %2201 = vmatprep.mubr.bf16.mxu1 %v1572_v46 }
 0x746   : > { %2202 = vmatmul.mubr.bf16.vlgmr.msra.gmra.mrb[12].mxu1 %v1573_v45 }
 0x819   : > { %v2203_v48 = vpop.f32.mrb[12].mxu1 }
 0x81a   : > { %v1688_v49 = vadd.f32 %v2203_v48, %v1949_v47  ;;  %v1679_v50 = vpop.f32.mrb[13].mxu1 }
 0x81b   : > { %v1680_v51 = vadd.f32 %v1949_v47, %v1679_v50  ;;  %v2204_v52 = vpop.f32.mrb[14].mxu1 }
 0x81c   : > { %1696 = vst [vmem:[%s682_s16 + $0x10] sm:$0xff] %v1688_v49  ;;  %v1691_v53 = vadd.f32 %v2204_v52, %v1949_v47  ;;  %v1682_v54 = vpop.f32.mrb[15].mxu1 }
 0x81d   : > { %1694 = vst [vmem:[%s682_s16] sm:$0xff] %v1680_v51  ;;  %v1683_v55 = vadd.f32 %v1949_v47, %v1682_v54 }
 0x81e   : > { %1697 = vst [vmem:[%s682_s16 + $0x18] sm:$0xff] %v1691_v53 }
 0x81f   : > { %1695 = vst [vmem:[%s682_s16 + $0x8] sm:$0xff] %v1683_v55 }
 0x820   : > { %2669 = shalt.err (!%p2666_p10)
}
 0x821   : > { %s2670_s30 = scalar_lea.hbm %s3225_s29, 512  ;;  %s2674_s17 = scalar_lea.hbm %s3332_s12, 1024 }
 0x822   : > { %p2671_p11 = scmp.ne.s32.totalorder %s3225_s29, %s2670_s30  ;;  %p2675_p7 = scmp.lt.u32.totalorder %s3225_s29, %s3332_s12 }
 0x823   : > { %p2676_p6 = scmp.lt.u32.totalorder %s2674_s17, %s2670_s30  ;;  %p2678_p12 = scmp.lt.u32.totalorder %s2670_s30, %s3225_s29 }
 0x824   : > { %p2672_p3 = pnand %p2671_p11, %p3333_p1 }
 0x825   : > { %p2677_p9 = por %p2676_p6, %p2675_p7 }
 0x826   : > { %p2673_p5 = pneg %p2672_p3 }
 0x827   : > { %p2679_p13 = por %p2678_p12, %p2677_p9 }
 0x829   : > { %p2680_p0 = pnand %p2679_p13, %p2673_p5 }
 0x82b   : > { %2683 = shalt.err (!%p2680_p0)
}
 0x82c   : > { %s2754_s19 = smov 128   ;;  %s2755_s20 = smov 8  }
 0x82d   : > { %2239 = dma.vmem_to_hbm [thread:$0]  (%p3333_p1), %s3220_s8, 512, %s3225_s29, %s1699_s0, %s2754_s19, %s2754_s19, %s2755_s20  }
 0x82e PF: > { %s1727_s14 = sand.u32 1, %s2726_s24   ;;  %p3334_p2 = scmp.ne.s32.totalorder %s3313_s23, 0 }
 0x82f   : > { %p3335_p8 = scmp.ge.s32.totalorder %s2738_s27, 2  ;;  %s1728_s30 = scalar_lea.sflag [#allocation4], %s1727_s14 }
 0x831   : > { %p2271_p4 = pnand %p3335_p8, %p3334_p2 }
 0x833   : > { %2721 = dma.done.wait (!%p2271_p4), %s1728_s30, 512  }
 0x834   : > { %2723 = vsyncadd (!%p2271_p4), %s1728_s30, 4294966784  ;;  %p34_p10 = scmp.ge.s32.totalorder %s3082_s18, 4   ;;  %s3336_s24 = smov %s2730_s25 }
 0x835   : > { %s3337_s25 = smov %s2734_s26  ;;  %s3338_s26 = smov %s3093_s6 }
 0x836   : > { %s3339_s27 = smov %s3082_s18  ;;  %36 = sbr.rel (!%p34_p10) target bundleno = 21 (0x15), region = 165 }
 0x83d   :  { %1733 = vsyncpa [#allocation3], 1 }
 0x83e   :  { %1735 = vsyncpa [#allocation3 + $0x1], 1 }
 0x83f   :  { %1736 = vsyncpa [#allocation6], 1 }
 0x840   :  { %1737 = vsyncpa [#allocation9], 1 }
 0x841   :  { %1738 = vsyncpa [#allocation12], 1 }
 0x842   :  { %1739 = vsyncpa [#allocation15], 1 }
 0x843   :  { %1740 = vsyncpa [#allocation4], 1 }
 0x844   :  { %1742 = vsyncpa [#allocation4 + $0x1], 1 }

</bundles_post_ra>
